<compile_context>
chip_gen: v7x
topology: tpu7x:2x2x1
jax: 0.10.0
libtpu: 0.0.40
codegen_flags: <defaults>
</compile_context>

<pallas_src>
import jax
import jax.numpy as jnp
from jax.experimental import pallas as pl
from jax.experimental.pallas import tpu as pltpu

_LANE = 128
_TARGET_BLOCK_BYTES = 2 << 20  # ~2 MiB per x-block (v5e-safe with double buffering)


def mask_layer_2d(x, S, *, append=True, value=0.0):
    """Pallas implementation of MaskLayer2d.forward((x, S)).

    x: (B, C, H, W) float array
    S: (B, 1, H, W) mask (0/1), broadcast across channels; any numeric/bool dtype
    returns: (B, C+1, H, W) if append else (B, C, H, W), dtype = x.dtype
    """
    B, C, H, W = x.shape
    assert S.shape == (B, 1, H, W), "mask S must be (B, 1, H, W)"
    HW = H * W
    Cout = C + 1 if append else C
    value = float(value)  # plain Python scalar -> compile-time literal in the kernel
    out_dtype = x.dtype
    itemsize = jnp.dtype(out_dtype).itemsize

    # ---- tile selection -----------------------------------------------------
    # Spatial tile: whole (padded) HW if one batch slab fits the budget,
    # otherwise the largest multiple of 128 that does.
    hw_pad128 = pl.cdiv(HW, _LANE) * _LANE
    if C * hw_pad128 * itemsize <= _TARGET_BLOCK_BYTES:
        HW_t = hw_pad128
    else:
        HW_t = max(_LANE, (_TARGET_BLOCK_BYTES // (C * itemsize * _LANE)) * _LANE)
    HW_pad = pl.cdiv(HW, HW_t) * HW_t
    n_s = HW_pad // HW_t

    # Batch tile: fuse batch elements (only when a whole slab fits) so each grid
    # step moves ~1-2 MiB instead of a few KiB (per-step overhead dominates tiny
    # blocks). Keep Bt a divisor of B so every block is full.
    if n_s == 1:
        per_batch = C * HW_pad * itemsize
        Bt = max(1, min(B, _TARGET_BLOCK_BYTES // per_batch))
        while B % Bt:
            Bt -= 1
    else:
        Bt = 1
    n_b = B // Bt

    # ---- wrapper-side layout plumbing (reshape + lane padding only) ----------
    x2 = x.reshape(B, C, HW)
    s2 = S.reshape(B, 1, HW)  # native dtype; cast happens inside the kernel
    if HW_pad != HW:
        x2 = jnp.pad(x2, ((0, 0), (0, 0), (0, HW_pad - HW)))
        s2 = jnp.pad(s2, ((0, 0), (0, 0), (0, HW_pad - HW)))

    # ---- kernel ---------------------------------------------------------------
    def kernel(x_ref, s_ref, o_ref):
        xv = x_ref[...]                          # (Bt, C, HW_t)
        sv = s_ref[...].astype(out_dtype)        # (Bt, 1, HW_t), cast is free VPU work
        masked = sv * (xv - value) + value       # == x*S + value*(1-S)
        if append:
            # Single dense store: concat in registers, avoid a 1-sublane partial
            # store at sublane offset C.
            o_ref[...] = jnp.concatenate([masked, sv], axis=1)
        else:
            o_ref[...] = masked

    bytes_accessed = int(
        B * C * HW_pad * itemsize                                  # x in
        + B * 1 * HW_pad * jnp.dtype(S.dtype).itemsize             # S in
        + B * Cout * HW_pad * itemsize                             # out
    )
    cost = pl.CostEstimate(
        flops=int(2 * B * C * HW_pad),
        transcendentals=0,
        bytes_accessed=bytes_accessed,
    )

    out = pl.pallas_call(
        kernel,
        out_shape=jax.ShapeDtypeStruct((B, Cout, HW_pad), out_dtype),
        grid=(n_b, n_s),
        in_specs=[
            pl.BlockSpec((Bt, C, HW_t), lambda b, s: (b, 0, s)),
            pl.BlockSpec((Bt, 1, HW_t), lambda b, s: (b, 0, s)),
        ],
        out_specs=pl.BlockSpec((Bt, Cout, HW_t), lambda b, s: (b, 0, s)),
        compiler_params=pltpu.CompilerParams(
            dimension_semantics=("parallel", "parallel"),
        ),
        cost_estimate=cost,
    )(x2, s2)

    if HW_pad != HW:
        out = out[:, :, :HW]
    return out.reshape(B, Cout, H, W)


if __name__ == "__main__":
    key = jax.random.PRNGKey(0)
    kx, ks = jax.random.split(key)

    B, C, H, W = 2, 4, 16, 16
    x = jax.random.normal(kx, (B, C, H, W), dtype=jnp.float32)
    # Binary mask over spatial locations (broadcast across channels), as in weightedSHAP.
    S = jax.random.bernoulli(ks, p=0.5, shape=(B, 1, H, W)).astype(jnp.float32)

    append = True
    value = 0.0

    out = jax.block_until_ready(mask_layer_2d(x, S, append=append, value=value))

    # Pure-JAX reference.
    ref = x * S + value * (1.0 - S)
    if append:
        ref = jnp.concatenate([ref, S], axis=1)

    assert out.shape == ref.shape
    assert jnp.allclose(out, ref, atol=1e-6, rtol=1e-6)

    print("KERNEL_OK")
</pallas_src>

<mosaic_0001>
module attributes {stable_mosaic.version = 11 : i64} {
  func.func @kernel(%arg0: i32, %arg1: i32, %arg2: memref<2x4x256xf32, #tpu.memory_space<vmem>>, %arg3: memref<2x1x256xf32, #tpu.memory_space<vmem>>, %arg4: memref<2x5x256xf32, #tpu.memory_space<vmem>>) attributes {dimension_semantics = [#tpu.dimension_semantics<parallel>, #tpu.dimension_semantics<parallel>], iteration_bounds = array<i64: 1, 1>, scalar_prefetch = 0 : i64, scratch_operands = 0 : i64, tpu.core_type = #tpu.core_type<tc>, window_params = [{transform_indices = @transform_0, window_bounds = array<i64: 2, 4, 256>}, {transform_indices = @transform_1, window_bounds = array<i64: 2, 1, 256>}, {transform_indices = @transform_2, window_bounds = array<i64: 2, 5, 256>}]} {
    %c0 = arith.constant 0 : index
    %c0_0 = arith.constant 0 : index
    %c0_1 = arith.constant 0 : index
    %0 = vector.load %arg2[%c0, %c0_0, %c0_1] : memref<2x4x256xf32, #tpu.memory_space<vmem>>, vector<2x4x256xf32>
    %c0_2 = arith.constant 0 : index
    %c0_3 = arith.constant 0 : index
    %c0_4 = arith.constant 0 : index
    %1 = vector.load %arg3[%c0_2, %c0_3, %c0_4] : memref<2x1x256xf32, #tpu.memory_space<vmem>>, vector<2x1x256xf32>
    %cst = arith.constant 0.000000e+00 : f32
    %2 = vector.broadcast %cst : f32 to vector<2x4x256xf32>
    %3 = arith.subf %0, %2 : vector<2x4x256xf32>
    %4 = vector.broadcast %1 : vector<2x1x256xf32> to vector<2x4x256xf32>
    %5 = arith.mulf %4, %3 : vector<2x4x256xf32>
    %cst_5 = arith.constant 0.000000e+00 : f32
    %6 = vector.broadcast %cst_5 : f32 to vector<2x4x256xf32>
    %7 = arith.addf %5, %6 : vector<2x4x256xf32>
    %8 = tpu.concatenate %7, %1 in 1 : vector<2x4x256xf32>, vector<2x1x256xf32> -> vector<2x5x256xf32>
    %c0_6 = arith.constant 0 : index
    %c0_7 = arith.constant 0 : index
    %c0_8 = arith.constant 0 : index
    %9 = vector.load %arg4[%c0_6, %c0_7, %c0_8] : memref<2x5x256xf32, #tpu.memory_space<vmem>>, vector<2x5x256xf32>
    tpu.vector_store %arg4[%c0_6, %c0_7, %c0_8], %8 {strides = array<i32>} : memref<2x5x256xf32, #tpu.memory_space<vmem>>, vector<2x5x256xf32>,
    return
  }
  func.func @transform_0(%arg0: i32, %arg1: i32) -> (i32, i32, i32) {
    %c0_i32 = arith.constant 0 : i32
    %c0_i32_0 = arith.constant 0 : i32
    return %arg0, %c0_i32, %arg1 : i32, i32, i32
  }
  func.func @transform_1(%arg0: i32, %arg1: i32) -> (i32, i32, i32) {
    %c0_i32 = arith.constant 0 : i32
    %c0_i32_0 = arith.constant 0 : i32
    return %arg0, %c0_i32, %arg1 : i32, i32, i32
  }
  func.func @transform_2(%arg0: i32, %arg1: i32) -> (i32, i32, i32) {
    %c0_i32 = arith.constant 0 : i32
    %c0_i32_0 = arith.constant 0 : i32
    return %arg0, %c0_i32, %arg1 : i32, i32, i32
  }
}

</mosaic_0001>

<bundles_post_ra>
// kernel: tpu_custom_call.1
= control target key start
LH: loop header
LB: loop body
LE: loop exit
PB: predicated region body
PF: predicated region fallthrough
CT: control target
= control target key end

     0   :  { %7 = vsyncpa [#allocation3], 0  ;;  %s207_s0 = inlined_call_operand.hbm [shape: f32[2,4,256], index: 0, kind: input, shape index: {}]   ;;  %s208_s1 = inlined_call_operand.hbm [shape: f32[2,1,256], index: 1, kind: input, shape index: {}]   ;;  %s209_s2 = inlined_call_operand.vmem [shape: f32[2,5,256], index: 2, kind: output, shape index: {}]  }
   0x1   :  { %8 = vsyncpa [#allocation5], 0  ;;  %s150_s9 = smov [#allocation2]   ;;  %s102_s13 = scalar_lea.hbm %s207_s0, 256 }
   0x2   :  { %s14_s10 = sshll.u32 %s150_s9, 4  ;;  %p103_p0 = scmp.ne.s32.totalorder %s207_s0, %s102_s13  ;;  %s15_s10 = int_to_ptr.vmem [resolvable:$true] %s14_s10 }
   0x3   :  { %p106_p1 = scmp.lt.u32.totalorder %s102_s13, %s207_s0 }
   0x5   :  { %p108_p2 = pnand %p106_p1, %p103_p0 }
   0x7   :  { %111 = shalt.err (!%p108_p2)
}
   0x8   :  { %s112_s18 = scalar_lea.vmem %s15_s10, 256  ;;  %p117_p4 = scmp.lt.s32.totalorder %s15_s10, %s15_s10 }
   0x9   :  { %p113_p3 = scmp.ne.s32.totalorder %s15_s10, %s112_s18  ;;  %p118_p5 = scmp.lt.s32.totalorder %s112_s18, %s112_s18 }
   0xb   :  { %p119_p6 = por %p118_p5, %p117_p4 }
   0xd   :  { %p120_p7 = pnand %p119_p6, %p113_p3 }
   0xf   :  { %123 = shalt.err (!%p120_p7)
}
  0x10   :  { %s151_s19 = smov 128   ;;  %s152_s20 = smov 8  }
  0x11   :  { %20 = dma.hbm_to_vmem [thread:$0]  %s207_s0, 256, %s15_s10, [#allocation3], %s151_s19, %s151_s19, %s152_s20  }
  0x12   :  { %s153_s23 = smov [#allocation4]   ;;  %s124_s27 = scalar_lea.hbm %s208_s1, 64 }
  0x13   :  { %s26_s24 = sshll.u32 %s153_s23, 4  ;;  %p125_p8 = scmp.ne.s32.totalorder %s208_s1, %s124_s27  ;;  %s27_s24 = int_to_ptr.vmem [resolvable:$true] %s26_s24 }
  0x14   :  { %p128_p9 = scmp.lt.u32.totalorder %s124_s27, %s208_s1 }
  0x16   :  { %p130_p10 = pnand %p128_p9, %p125_p8 }
  0x18   :  { %133 = shalt.err (!%p130_p10)
}
  0x19   :  { %s134_s4 = scalar_lea.vmem %s27_s24, 64  ;;  %p139_p12 = scmp.lt.s32.totalorder %s27_s24, %s27_s24 }
  0x1a   :  { %p135_p11 = scmp.ne.s32.totalorder %s27_s24, %s134_s4  ;;  %p140_p13 = scmp.lt.s32.totalorder %s134_s4, %s134_s4 }
  0x1c   :  { %p141_p0 = por %p140_p13, %p139_p12 }
  0x1e   :  { %p142_p1 = pnand %p141_p0, %p135_p11 }
  0x20   :  { %145 = shalt.err (!%p142_p1)
}
  0x21   :  { %s154_s0 = smov 32   ;;  %s155_s5 = smov 2  }
  0x22   :  { %32 = dma.hbm_to_vmem [thread:$0]  %s208_s1, 64, %s27_s24, [#allocation5], %s154_s0, %s154_s0, %s155_s5  }
  0x23   :  { %146 = dma.done.wait [#allocation3], 256  }
  0x24   :  { %147 = vsyncadd [#allocation3], 4294967040 }
  0x25   :  { %148 = dma.done.wait [#allocation5], 64  }
  0x26   :  { %149 = vsyncadd [#allocation5], 4294967232  ;;  %v45_v0 = vlaneseq  ;;  %v39_v4 = vld [vmem:[#allocation2] sm:$0xff]  ;;  %v41_v5 = vld [vmem:[#allocation4] sm:$0x3]  ;;  %vm79_vm0 = vcmask 1043456  }
  0x27   :  { %v40_v6 = vld [vmem:[#allocation2 + $0x8] sm:$0xff]  ;;  %v67_v9 = vcombine.high %v39_v4, %v39_v4  ;;  %v42_v10 = vld [vmem:[#allocation4 + $0x2] sm:$0x3] }
  0x28   :  { %v46_v1 = vshrl.u32 %v45_v0, 7  ;;  %v68_v11 = vcombine.high %v40_v6, %v40_v6 }
  0x2a   :  { %v47_v2 = vsub.s32 0, %v46_v1  ;;  %v51_v3 = vsub.s32 1, %v46_v1 }
  0x2c   :  { %v48_v7 = vrot.slane %v41_v5, %v47_v2  ;;  %v52_v8 = vrot.slane %v41_v5, %v51_v3  ;;  %v56_v12 = vrot.slane %v42_v10, %v47_v2  ;;  %v60_v13 = vrot.slane %v42_v10, %v51_v3 }
  0x2e   :  { %v71_v14 = vmul.f32 %v48_v7, %v39_v4  ;;  %v72_v15 = vmul.f32 %v67_v9, %v52_v8  ;;  %v73_v16 = vmul.f32 %v56_v12, %v40_v6  ;;  %v74_v17 = vmul.f32 %v68_v11, %v60_v13 }
  0x30   :  { %v80_v18 = vsel %vm79_vm0, %v71_v14, %v48_v7  ;;  %v81_v19 = vsel %vm79_vm0, %v72_v15, %v52_v8  ;;  %v82_v20 = vsel %vm79_vm0, %v73_v16, %v56_v12  ;;  %v83_v21 = vsel %vm79_vm0, %v74_v17, %v60_v13 }
  0x31   :  { %84 = vst [vmem:[%s209_s2] sm:$0x1f] %v80_v18  ;;  %85 = vst [vmem:[%s209_s2 + $0x8] sm:$0x1f] %v81_v19 }
  0x32   :  { %86 = vst [vmem:[%s209_s2 + $0x10] sm:$0x1f] %v82_v20  ;;  %87 = vst [vmem:[%s209_s2 + $0x18] sm:$0x1f] %v83_v21 }
  0x33   :  { %92 = vsyncpa [#allocation3], 1 }
  0x34   :  { %93 = vsyncpa [#allocation5], 1 }

</bundles_post_ra>
